<compile_context>
chip_gen: v5e
topology: v5e:2x2
jax: 0.10.0
libtpu: 0.0.40
codegen_flags: <defaults>
</compile_context>

<pallas_src>
import functools

import jax
import jax.numpy as jnp
from jax.experimental import pallas as pl
from jax.experimental.pallas import tpu as pltpu

NUM_CLASSES = 13            # Linear(128, 13)
C_IN, C_MID, C_OUT = 32, 256, 128


def fused_cnn_kernel(x_ref, w1t_ref, b1_ref, w2pt_ref, b2p_ref, w3t_ref,
                     b3_ref, o_ref):
    wdt = w1t_ref.dtype
    B, L, c_in = x_ref.shape
    c_out = w2pt_ref.shape[1]           # 128
    k_cls = w3t_ref.shape[1]            # 13
    J = c_out // L                      # channels per torch-view column block (8 @ L=16)

    # conv1 (k=1) + ReLU as ONE matmul: rows = (sample, position), lanes = 256.
    xr = x_ref[...].reshape(B * L, c_in).astype(wdt)                     # (B*L, 32)
    h1 = jnp.dot(xr, w1t_ref[...], preferred_element_type=jnp.float32)   # (B*L, 256)
    h1 = jnp.maximum(h1 + b1_ref[...], 0.0)

    # conv2 (k=1) + ReLU, row-major and lane-dense: (B*L, 128), M = B*L.
    # Lanes are sigma-permuted channels: lane j*L + r  <->  conv2 channel r*J + j,
    # so each contiguous 16-lane block j already holds one view-column group.
    h2 = jnp.dot(h1.astype(wdt), w2pt_ref[...],
                 preferred_element_type=jnp.float32)                     # (B*L, 128)
    h2 = jnp.maximum(h2 + b2p_ref[...], 0.0)

    # Build the torch view(-1,128) rows: V[(n,r), j*L + l] = conv2[n, r*J + j, l].
    # Per-sample (position <-> view-row) swap runs on the otherwise-idle XLU:
    # one batched last-two-dims transpose, J static outer-dim slices, one lane concat.
    h2s = h2.reshape(B, L, c_out)                      # free leading-dim split
    h2t = jnp.transpose(h2s, (0, 2, 1))                # (B, 128, L)  XLU transpose
    h2t = h2t.reshape(B, J, L, L)                      # free: [n, j, r, l]
    v = jnp.concatenate([h2t[:, j] for j in range(J)], axis=-1)   # (B, L, 128)

    # Linear(128 -> 13): single K=128 matmul with M = B*L; store 13-wide (no padding).
    out = jnp.dot(v.reshape(B * L, c_out).astype(wdt), w3t_ref[...],
                  preferred_element_type=jnp.float32)                    # (B*L, 13)
    out = out + b3_ref[...]
    o_ref[...] = out.reshape(B, L, k_cls).astype(o_ref.dtype)


def prepare_params(params, seq_len, dtype=jnp.bfloat16):
    """One-time weight re-layout (hoisted out of the per-call path).

    dtype=bfloat16 (default) feeds the MXU in bf16 with f32 accumulation in-kernel;
    pass dtype=jnp.float32 to reproduce the PyTorch f32 numerics bit-for-bit(ish)."""
    L = seq_len
    assert C_OUT % L == 0 and L % 8 == 0, "seq_len must divide 128 and be a multiple of 8"
    J = C_OUT // L

    w1, b1 = params["w1"], params["b1"]           # (256,32), (256,)
    w2, b2 = params["w2"], params["b2"]           # (128,256), (128,)
    w3, b3 = params["w3"], params["b3"]           # (13,128), (13,)

    # sigma[j*L + r] = r*J + j : conv2-channel order whose 16-lane blocks match the
    # torch view(-1,128) column groups.
    sigma = jnp.arange(C_OUT).reshape(L, J).T.reshape(-1)

    return {
        "w1t":  w1.T.astype(dtype),                                # (32, 256)
        "b1":   b1.reshape(1, C_MID).astype(jnp.float32),          # (1, 256)
        "w2pt": w2[sigma, :].T.astype(dtype),                      # (256, 128) cols permuted
        "b2p":  b2[sigma].reshape(1, C_OUT).astype(jnp.float32),   # (1, 128)   permuted
        "w3t":  w3.T.astype(dtype),                                # (128, 13)
        "b3":   b3.reshape(1, NUM_CLASSES).astype(jnp.float32),    # (1, 13)
    }


def _pick_block(n):
    """Largest per-step sample batch <= 64 dividing n (B*L >= 256 once B >= 16)."""
    for b in (64, 32, 16, 8, 4, 2, 1):
        if n % b == 0:
            return b
    return 1


@functools.partial(jax.jit, static_argnames=("block_samples",))
def cnn_forward(X, prep, block_samples=None):
    """X: (N, 32, L) float32 (PyTorch NCL).  Returns (N*L, 13), matching CNN.forward."""
    N, c_in, L = X.shape
    assert c_in == C_IN and C_OUT % L == 0 and L % 8 == 0
    B = block_samples if block_samples is not None else _pick_block(N)
    assert N % B == 0, "N must be a multiple of block_samples"

    # Layout plumbing only; X is tiny (2 KiB/sample) next to the removed padded-output path.
    x_rows = jnp.transpose(X, (0, 2, 1))            # (N, L, 32)

    out = pl.pallas_call(
        fused_cnn_kernel,
        out_shape=jax.ShapeDtypeStruct((N, L, NUM_CLASSES), jnp.float32),
        grid_spec=pltpu.PrefetchScalarGridSpec(
            num_scalar_prefetch=0,
            grid=(N // B,),                          # B samples per step
            in_specs=[
                pl.BlockSpec((B, L, C_IN), lambda s: (s, 0, 0)),
                # Grid-invariant weights: index map is constant, so they stay
                # VMEM-resident and are never re-DMA'd across steps.
                pl.BlockSpec((C_IN, C_MID), lambda s: (0, 0)),
                pl.BlockSpec((1, C_MID), lambda s: (0, 0)),
                pl.BlockSpec((C_MID, C_OUT), lambda s: (0, 0)),
                pl.BlockSpec((1, C_OUT), lambda s: (0, 0)),
                pl.BlockSpec((C_OUT, NUM_CLASSES), lambda s: (0, 0)),
                pl.BlockSpec((1, NUM_CLASSES), lambda s: (0, 0)),
            ],
            out_specs=pl.BlockSpec((B, L, NUM_CLASSES), lambda s: (s, 0, 0)),
        ),
        compiler_params=pltpu.CompilerParams(
            dimension_semantics=("parallel",)),      # sample blocks shard across v7x TCs
    )(x_rows, prep["w1t"], prep["b1"], prep["w2pt"], prep["b2p"],
      prep["w3t"], prep["b3"])

    # Rows are already (n, r)-ordered; this reshape is free (no extra HBM pass).
    return out.reshape(N * L, NUM_CLASSES)


def init_params(key):
    # Shapes matching the PyTorch module (k=1 conv kernels squeezed):
    # Conv1d(32,256,1): (256,32),(256,)  Conv1d(256,128,1): (128,256),(128,)
    # Linear(128,13): (13,128),(13,)
    k1, k2, k3, k4, k5, k6 = jax.random.split(key, 6)

    def u(k, shape, fan_in):
        bound = 1.0 / jnp.sqrt(fan_in)
        return jax.random.uniform(k, shape, jnp.float32, -bound, bound)

    return {
        "w1": u(k1, (C_MID, C_IN), float(C_IN)),
        "b1": u(k2, (C_MID,), float(C_IN)),
        "w2": u(k3, (C_OUT, C_MID), float(C_MID)),
        "b2": u(k4, (C_OUT,), float(C_MID)),
        "w3": u(k5, (NUM_CLASSES, C_OUT), float(C_OUT)),
        "b3": u(k6, (NUM_CLASSES,), float(C_OUT)),
    }


if __name__ == "__main__":
    key = jax.random.PRNGKey(0)
    kx, kp = jax.random.split(key)

    N, L = 8, 16
    X = jax.random.normal(kx, (N, C_IN, L), jnp.float32)
    params = init_params(kp)
    prep = prepare_params(params, seq_len=L)        # bf16 weights (default), f32 accum

    out = cnn_forward(X, prep, block_samples=4)     # 2 grid steps, B*L = 64 rows/step
    out = jax.block_until_ready(out)                # (N*L, 13) = (128, 13)

    # Pure-JAX f32 reference mirroring PyTorch exactly (including the NCL view quirk).
    hp = jax.lax.Precision.HIGHEST
    h1 = jnp.maximum(jnp.einsum("oc,ncl->nol", params["w1"], X, precision=hp)
                     + params["b1"][None, :, None], 0.0)
    h2 = jnp.maximum(jnp.einsum("oc,ncl->nol", params["w2"], h1, precision=hp)
                     + params["b2"][None, :, None], 0.0)
    ref = jnp.dot(jnp.reshape(h2, (-1, 128)), params["w3"].T,
                  precision=hp) + params["b3"]

    assert out.shape == (N * L, NUM_CLASSES)
    max_err = float(jnp.max(jnp.abs(out - ref)))
    # bf16 weights / activations with f32 accumulation -> relaxed tolerance.
    assert jnp.allclose(out, ref, atol=2e-2, rtol=2e-2), max_err

    print("KERNEL_OK")
</pallas_src>

<mosaic_0001>
module attributes {stable_mosaic.version = 11 : i64} {
  func.func @fused_cnn_kernel(%arg0: i32, %arg1: memref<4x16x32xf32, #tpu.memory_space<vmem>>, %arg2: memref<32x256xbf16, #tpu.memory_space<vmem>>, %arg3: memref<1x256xf32, #tpu.memory_space<vmem>>, %arg4: memref<256x128xbf16, #tpu.memory_space<vmem>>, %arg5: memref<1x128xf32, #tpu.memory_space<vmem>>, %arg6: memref<128x13xbf16, #tpu.memory_space<vmem>>, %arg7: memref<1x13xf32, #tpu.memory_space<vmem>>, %arg8: memref<4x16x13xf32, #tpu.memory_space<vmem>>) attributes {dimension_semantics = [#tpu.dimension_semantics<parallel>], iteration_bounds = array<i64: 2>, scalar_prefetch = 0 : i64, scratch_operands = 0 : i64, tpu.core_type = #tpu.core_type<tc>, window_params = [{transform_indices = @transform_0, window_bounds = array<i64: 4, 16, 32>}, {pipeline_mode = #tpu.pipeline_mode<synchronous>, transform_indices = @transform_1, window_bounds = array<i64: 32, 256>}, {pipeline_mode = #tpu.pipeline_mode<synchronous>, transform_indices = @transform_2, window_bounds = array<i64: 1, 256>}, {pipeline_mode = #tpu.pipeline_mode<synchronous>, transform_indices = @transform_3, window_bounds = array<i64: 256, 128>}, {pipeline_mode = #tpu.pipeline_mode<synchronous>, transform_indices = @transform_4, window_bounds = array<i64: 1, 128>}, {pipeline_mode = #tpu.pipeline_mode<synchronous>, transform_indices = @transform_5, window_bounds = array<i64: 128, 13>}, {pipeline_mode = #tpu.pipeline_mode<synchronous>, transform_indices = @transform_6, window_bounds = array<i64: 1, 13>}, {transform_indices = @transform_7, window_bounds = array<i64: 4, 16, 13>}]} {
    %c0 = arith.constant 0 : index
    %c0_0 = arith.constant 0 : index
    %c0_1 = arith.constant 0 : index
    %0 = vector.load %arg1[%c0, %c0_0, %c0_1] : memref<4x16x32xf32, #tpu.memory_space<vmem>>, vector<4x16x32xf32>
    %1 = vector.shape_cast %0 : vector<4x16x32xf32> to vector<64x32xf32>
    %2 = arith.truncf %1 : vector<64x32xf32> to vector<64x32xbf16>
    %c0_2 = arith.constant 0 : index
    %c0_3 = arith.constant 0 : index
    %3 = vector.load %arg2[%c0_2, %c0_3] : memref<32x256xbf16, #tpu.memory_space<vmem>>, vector<32x256xbf16>
    %cst = arith.constant dense<0.000000e+00> : vector<64x256xf32>
    %4 = tpu.matmul %2, %3, %cst {dimension_numbers = #tpu.dot_dimension_numbers<[1], [0], [0], [1], [0, 0, 1, 1], [], []>} : vector<64x32xbf16>, vector<32x256xbf16>, vector<64x256xf32> -> vector<64x256xf32>
    %c0_4 = arith.constant 0 : index
    %c0_5 = arith.constant 0 : index
    %5 = vector.load %arg3[%c0_4, %c0_5] : memref<1x256xf32, #tpu.memory_space<vmem>>, vector<1x256xf32>
    %6 = vector.broadcast %5 : vector<1x256xf32> to vector<64x256xf32>
    %7 = arith.addf %4, %6 : vector<64x256xf32>
    %cst_6 = arith.constant 0.000000e+00 : f32
    %8 = vector.broadcast %cst_6 : f32 to vector<64x256xf32>
    %9 = arith.maximumf %7, %8 : vector<64x256xf32>
    %10 = arith.truncf %9 : vector<64x256xf32> to vector<64x256xbf16>
    %c0_7 = arith.constant 0 : index
    %c0_8 = arith.constant 0 : index
    %11 = vector.load %arg4[%c0_7, %c0_8] : memref<256x128xbf16, #tpu.memory_space<vmem>>, vector<256x128xbf16>
    %cst_9 = arith.constant dense<0.000000e+00> : vector<64x128xf32>
    %12 = tpu.matmul %10, %11, %cst_9 {dimension_numbers = #tpu.dot_dimension_numbers<[1], [0], [0], [1], [0, 0, 1, 1], [], []>} : vector<64x256xbf16>, vector<256x128xbf16>, vector<64x128xf32> -> vector<64x128xf32>
    %c0_10 = arith.constant 0 : index
    %c0_11 = arith.constant 0 : index
    %13 = vector.load %arg5[%c0_10, %c0_11] : memref<1x128xf32, #tpu.memory_space<vmem>>, vector<1x128xf32>
    %14 = vector.broadcast %13 : vector<1x128xf32> to vector<64x128xf32>
    %15 = arith.addf %12, %14 : vector<64x128xf32>
    %cst_12 = arith.constant 0.000000e+00 : f32
    %16 = vector.broadcast %cst_12 : f32 to vector<64x128xf32>
    %17 = arith.maximumf %15, %16 : vector<64x128xf32>
    %18 = vector.shape_cast %17 : vector<64x128xf32> to vector<4x16x128xf32>
    %19 = tpu.transpose %18, [0, 2, 1] : vector<4x16x128xf32> -> vector<4x128x16xf32>
    %20 = vector.shape_cast %19 : vector<4x128x16xf32> to vector<4x8x16x16xf32>
    %21 = vector.extract_strided_slice %20 {offsets = [0, 0, 0, 0], sizes = [4, 1, 16, 16], strides = [1, 1, 1, 1]} : vector<4x8x16x16xf32> to vector<4x1x16x16xf32>
    %22 = vector.shape_cast %21 : vector<4x1x16x16xf32> to vector<4x16x16xf32>
    %23 = vector.extract_strided_slice %20 {offsets = [0, 1, 0, 0], sizes = [4, 1, 16, 16], strides = [1, 1, 1, 1]} : vector<4x8x16x16xf32> to vector<4x1x16x16xf32>
    %24 = vector.shape_cast %23 : vector<4x1x16x16xf32> to vector<4x16x16xf32>
    %25 = vector.extract_strided_slice %20 {offsets = [0, 2, 0, 0], sizes = [4, 1, 16, 16], strides = [1, 1, 1, 1]} : vector<4x8x16x16xf32> to vector<4x1x16x16xf32>
    %26 = vector.shape_cast %25 : vector<4x1x16x16xf32> to vector<4x16x16xf32>
    %27 = vector.extract_strided_slice %20 {offsets = [0, 3, 0, 0], sizes = [4, 1, 16, 16], strides = [1, 1, 1, 1]} : vector<4x8x16x16xf32> to vector<4x1x16x16xf32>
    %28 = vector.shape_cast %27 : vector<4x1x16x16xf32> to vector<4x16x16xf32>
    %29 = vector.extract_strided_slice %20 {offsets = [0, 4, 0, 0], sizes = [4, 1, 16, 16], strides = [1, 1, 1, 1]} : vector<4x8x16x16xf32> to vector<4x1x16x16xf32>
    %30 = vector.shape_cast %29 : vector<4x1x16x16xf32> to vector<4x16x16xf32>
    %31 = vector.extract_strided_slice %20 {offsets = [0, 5, 0, 0], sizes = [4, 1, 16, 16], strides = [1, 1, 1, 1]} : vector<4x8x16x16xf32> to vector<4x1x16x16xf32>
    %32 = vector.shape_cast %31 : vector<4x1x16x16xf32> to vector<4x16x16xf32>
    %33 = vector.extract_strided_slice %20 {offsets = [0, 6, 0, 0], sizes = [4, 1, 16, 16], strides = [1, 1, 1, 1]} : vector<4x8x16x16xf32> to vector<4x1x16x16xf32>
    %34 = vector.shape_cast %33 : vector<4x1x16x16xf32> to vector<4x16x16xf32>
    %35 = vector.extract_strided_slice %20 {offsets = [0, 7, 0, 0], sizes = [4, 1, 16, 16], strides = [1, 1, 1, 1]} : vector<4x8x16x16xf32> to vector<4x1x16x16xf32>
    %36 = vector.shape_cast %35 : vector<4x1x16x16xf32> to vector<4x16x16xf32>
    %37 = tpu.concatenate %22, %24, %26, %28, %30, %32, %34, %36 in 2 : vector<4x16x16xf32>, vector<4x16x16xf32>, vector<4x16x16xf32>, vector<4x16x16xf32>, vector<4x16x16xf32>, vector<4x16x16xf32>, vector<4x16x16xf32>, vector<4x16x16xf32> -> vector<4x16x128xf32>
    %38 = vector.shape_cast %37 : vector<4x16x128xf32> to vector<64x128xf32>
    %39 = arith.truncf %38 : vector<64x128xf32> to vector<64x128xbf16>
    %c0_13 = arith.constant 0 : index
    %c0_14 = arith.constant 0 : index
    %40 = vector.load %arg6[%c0_13, %c0_14] : memref<128x13xbf16, #tpu.memory_space<vmem>>, vector<128x13xbf16>
    %cst_15 = arith.constant dense<0.000000e+00> : vector<64x13xf32>
    %41 = tpu.matmul %39, %40, %cst_15 {dimension_numbers = #tpu.dot_dimension_numbers<[1], [0], [0], [1], [0, 0, 1, 1], [], []>} : vector<64x128xbf16>, vector<128x13xbf16>, vector<64x13xf32> -> vector<64x13xf32>
    %c0_16 = arith.constant 0 : index
    %c0_17 = arith.constant 0 : index
    %42 = vector.load %arg7[%c0_16, %c0_17] : memref<1x13xf32, #tpu.memory_space<vmem>>, vector<1x13xf32>
    %43 = vector.broadcast %42 : vector<1x13xf32> to vector<64x13xf32>
    %44 = arith.addf %41, %43 : vector<64x13xf32>
    %45 = vector.shape_cast %44 : vector<64x13xf32> to vector<4x16x13xf32>
    %c0_18 = arith.constant 0 : index
    %c0_19 = arith.constant 0 : index
    %c0_20 = arith.constant 0 : index
    %46 = vector.load %arg8[%c0_18, %c0_19, %c0_20] : memref<4x16x13xf32, #tpu.memory_space<vmem>>, vector<4x16x13xf32>
    tpu.vector_store %arg8[%c0_18, %c0_19, %c0_20], %45 {strides = array<i32>} : memref<4x16x13xf32, #tpu.memory_space<vmem>>, vector<4x16x13xf32>,
    return
  }
  func.func @transform_0(%arg0: i32) -> (i32, i32, i32) {
    %c0_i32 = arith.constant 0 : i32
    %c0_i32_0 = arith.constant 0 : i32
    %c0_i32_1 = arith.constant 0 : i32
    return %arg0, %c0_i32, %c0_i32_0 : i32, i32, i32
  }
  func.func @transform_1(%arg0: i32) -> (i32, i32) {
    %c0_i32 = arith.constant 0 : i32
    %c0_i32_0 = arith.constant 0 : i32
    %c0_i32_1 = arith.constant 0 : i32
    return %c0_i32, %c0_i32_0 : i32, i32
  }
  func.func @transform_2(%arg0: i32) -> (i32, i32) {
    %c0_i32 = arith.constant 0 : i32
    %c0_i32_0 = arith.constant 0 : i32
    %c0_i32_1 = arith.constant 0 : i32
    return %c0_i32, %c0_i32_0 : i32, i32
  }
  func.func @transform_3(%arg0: i32) -> (i32, i32) {
    %c0_i32 = arith.constant 0 : i32
    %c0_i32_0 = arith.constant 0 : i32
    %c0_i32_1 = arith.constant 0 : i32
    return %c0_i32, %c0_i32_0 : i32, i32
  }
  func.func @transform_4(%arg0: i32) -> (i32, i32) {
    %c0_i32 = arith.constant 0 : i32
    %c0_i32_0 = arith.constant 0 : i32
    %c0_i32_1 = arith.constant 0 : i32
    return %c0_i32, %c0_i32_0 : i32, i32
  }
  func.func @transform_5(%arg0: i32) -> (i32, i32) {
    %c0_i32 = arith.constant 0 : i32
    %c0_i32_0 = arith.constant 0 : i32
    %c0_i32_1 = arith.constant 0 : i32
    return %c0_i32, %c0_i32_0 : i32, i32
  }
  func.func @transform_6(%arg0: i32) -> (i32, i32) {
    %c0_i32 = arith.constant 0 : i32
    %c0_i32_0 = arith.constant 0 : i32
    %c0_i32_1 = arith.constant 0 : i32
    return %c0_i32, %c0_i32_0 : i32, i32
  }
  func.func @transform_7(%arg0: i32) -> (i32, i32, i32) {
    %c0_i32 = arith.constant 0 : i32
    %c0_i32_0 = arith.constant 0 : i32
    %c0_i32_1 = arith.constant 0 : i32
    return %arg0, %c0_i32, %c0_i32_0 : i32, i32, i32
  }
}

</mosaic_0001>

<bundles_post_ra>
// kernel: cnn_forward.1
= control target key start
LH: loop header
LB: loop body
LE: loop exit
PB: predicated region body
PF: predicated region fallthrough
CT: control target
= control target key end

     0   :  { %12 = vsyncpa [#allocation3], 0  ;;  %s2317_s0 = inlined_call_operand.hbm [shape: f32[8,16,32], index: 0, kind: input, shape index: {}]   ;;  %s2318_s1 = inlined_call_operand.vmem [shape: bf16[32,256], index: 1, kind: input, shape index: {}]   ;;  %s2319_s2 = inlined_call_operand.vmem [shape: f32[1,256], index: 2, kind: input, shape index: {}]   ;;  %s2320_s3 = inlined_call_operand.hbm [shape: bf16[256,128], index: 3, kind: input, shape index: {}]   ;;  %s2321_s4 = inlined_call_operand.vmem [shape: f32[1,128], index: 4, kind: input, shape index: {}]   ;;  %s2322_s5 = inlined_call_operand.vmem [shape: bf16[128,13], index: 5, kind: input, shape index: {}]   ;;  %s2323_s6 = inlined_call_operand.vmem [shape: f32[1,13], index: 6, kind: input, shape index: {}]   ;;  %s2324_s7 = inlined_call_operand.vmem [shape: f32[8,16,13], index: 7, kind: output, shape index: {}]  }
   0x1   :  { %14 = vsyncpa [#allocation3 + $0x1], 0 }
   0x2   :  { %15 = vsyncpa [#allocation5], 0  ;;  %s1956_s24 = smov 0   ;;  %s1958_s25 = smov 0  }
   0x3   :  { %s1960_s26 = smov 0   ;;  %s1962_s27 = smov 0  }
   0x4 LB: > { %s2325_s28 = sadd.s32 4294967295, %s1902_s27   ;;  %p41_p0 = scmp.ne.s32.totalorder %s1894_s25, %s1890_s24  ;;  %s1902_s27 = sphi %s1962_s27, %s2334_s27   ;;  %s1898_s26 = sphi %s1960_s26, %s2333_s26   ;;  %s1894_s25 = sphi %s1958_s25, %s2332_s25   ;;  %s1890_s24 = sphi %s1956_s24, %s2331_s24  }
   0x5   : > { %p1978_p1 = scmp.eq.s32.totalorder %s2325_s28, 0  ;;  %p1264_p2 = scmp.ge.s32.totalorder %s1902_s27, 1 }
   0x6   : > { %p204_p3 = scmp.lt.s32.totalorder %s1902_s27, 3  ;;  %s221_s10 = sshll.u32 %s2320_s3, 4  ;;  %s222_s10 = int_to_ptr.hbm [resolvable:$true] %s221_s10 }
   0x7   : > { %p1986_p4 = por %p1978_p1, %p41_p0  ;;  %s1904_s12 = smov [#allocation4]  }
   0x8   : > { %p1993_p5 = pnand %p1264_p2, %p204_p3  ;;  %s223_s13 = sshll.u32 %s1904_s12, 4  ;;  %s224_s13 = int_to_ptr.vmem [resolvable:$true] %s223_s13 }
   0x9   : > { %s2002_s14 = sadd.s32 1, %s1902_s27   ;;  %s1905_s15 = smov 64  }
   0xa   : > { %p1438_p6 = pneg %p1993_p5  ;;  %s1906_s16 = smov 4  }
   0xb   : > { %s25_s17 = ssub.s32 %s1902_s27, %s2002_s14  ;;  %s28_s18 = sadd.s32 1, %s1898_s26 }
   0xc   : > { %p1439_p7 = pnand %p1438_p6, %p1978_p1  ;;  %p26_p8 = scmp.eq.s32.totalorder %s25_s17, 0 }
   0xd   : > { %p35_p9 = scmp.ne.s32.totalorder %s1898_s26, %s1894_s25  ;;  %p36_p10 = scmp.eq.s32.totalorder %s1902_s27, 0 }
   0xe   : > { %1441 = dma.hbm_to_vmem [thread:$0]  (!%p1439_p7), %s222_s10, 2048, %s224_s13, [#allocation5], %s1905_s15, %s1905_s15, %s1906_s16  }
   0xf   : > { %p1447_p11 = scmp.lt.s32.totalorder %s1902_s27, 2  ;;  %p37_p12 = por %p36_p10, %p35_p9 }
  0x10   : > { %s2012_s19 = scalar_select %p26_p8, %s1898_s26, %s28_s18  }
  0x11   : > { %s246_s20 = sand.u32 1, %s1898_s26   ;;  %s1400_s22 = sshll.u32 %s1902_s27, 6 }
  0x12   : > { %s1267_s21 = sshll.u32 %s246_s20, 6  ;;  %s256_s8 = scalar_lea.hbm %s2317_s0, %s1400_s22 }
  0x13   : > { %s250_s9 = scalar_lea.vmem [#allocation2], %s1267_s21  ;;  %s257_s28 = sshll.u32 %s256_s8, 4  ;;  %s258_s28 = int_to_ptr.hbm [resolvable:$true] %s257_s28 }
  0x14   : > { %s259_s12 = sshll.u32 %s250_s9, 4  ;;  %p2019_p13 = pnand %p1447_p11, %p37_p12  ;;  %s260_s12 = int_to_ptr.vmem [resolvable:$true] %s259_s12 }
  0x15   : > { %s247_s13 = scalar_lea.sflag [#allocation3], %s246_s20  ;;  %s1834_s15 = sshra.s32 %s258_s28, 4  ;;  %s1835_s15 = int_to_ptr.hbm [resolvable:$true] %s1834_s15 }
  0x16   : > { %s1836_s16 = scalar_lea.hbm %s1835_s15, 64  ;;  %p1838_p2 = pneg %p2019_p13 }
  0x17   : > { %p1837_p0 = scmp.ne.s32.totalorder %s1835_s15, %s1836_s16  ;;  %s1841_s21 = scalar_lea.hbm %s2317_s0, 128 }
  0x18   : > { %p1842_p7 = scmp.lt.s32.totalorder %s1835_s15, %s2317_s0  ;;  %p1843_p8 = scmp.lt.s32.totalorder %s1841_s21, %s1836_s16 }
  0x19   : > { %p1839_p3 = pnand %p1838_p2, %p1837_p0 }
  0x1a   : > { %p1844_p9 = por %p1843_p8, %p1842_p7 }
  0x1b   : > { %p1840_p6 = pneg %p1839_p3 }
  0x1d   : > { %p1845_p10 = pnand %p1844_p9, %p1840_p6 }
  0x1f   : > { %1848 = shalt.err (!%p1845_p10)
}
  0x20   : > { %s1907_s20 = smov 128   ;;  %s1908_s24 = smov 8  }
  0x21   : > { %1445 = dma.hbm_to_vmem [thread:$0]  (!%p2019_p13), %s258_s28, 1024, %s260_s12, %s247_s13, %s1907_s20, %s1907_s20, %s1908_s24  }
  0x22   : > { %271 = sbr.rel (%p1993_p5) target bundleno = 1012 (0x3f4), region = 48  ;;  %s273_s8 = sand.u32 (!%p1993_p5), 1, %s1894_s25  }
  0x23   : > { %s1272_s9 = sshll.u32 (!%p1993_p5), %s273_s8, 6  ;;  %s274_s17 = scalar_lea.sflag (!%p1993_p5), [#allocation3], %s273_s8 }
  0x24   : > { %s2036_s18 = scalar_lea.vmem (!%p1993_p5), [#allocation2], %s1272_s9 }
  0x27   : > { %1881 = dma.done.wait (%p1986_p4), %s274_s17, 1024  }
  0x28   : > { %1883 = vsyncadd (%p1986_p4), %s274_s17, 4294966272 }
  0x29   : > { %1885 = dma.done.wait (%p1978_p1), [#allocation5], 2048  }
  0x2a   : > { %1887 = vsyncadd (%p1978_p1), [#allocation5], 4294965248  ;;  %v1287_v0 = vld [vmem:[%s2318_s1 + $0x10] sm:$0xf]  ;;  %v1405_v1 = vld [vmem:[%s2318_s1 + $0x14] sm:$0xf0] }
  0x2b   : > { %v1279_v2 = vld [vmem:[%s2318_s1] sm:$0xf]  ;;  %v1288_v3 = vor.u32 %v1405_v1, %v1287_v0  ;;  %v1403_v4 = vld [vmem:[%s2318_s1 + $0x4] sm:$0xf0]  ;;  %v1404_v7 = vld [vmem:[%s2318_s1 + $0x14] sm:$0xf] }
  0x2c   : > { %v324_v5 = vld [vmem:[%s2036_s18] sm:$0xff]  ;;  %v325_v6 = vld [vmem:[%s2036_s18 + $0x8] sm:$0xff]  ;;  %v1280_v8 = vor.u32 %v1403_v4, %v1279_v2  ;;  %v1289_v11 = vld [vmem:[%s2318_s1 + $0x18] sm:$0xf0]  ;;  %vm366_vm0 = vcmask 261120   ;;  %s1909_s12 = smov 16  }
  0x2d   : > { %385 = vmatpush.bf16.msra.mxu0 %v1288_v3  ;;  %1430 = vmatpush.bf16.msra.mxu1 %v1288_v3  ;;  %v328_v9 = vld [vmem:[%s2036_s18 + $0x20] sm:$0xff]  ;;  %v329_v10 = vld [vmem:[%s2036_s18 + $0x28] sm:$0xff]  ;;  %v1292_v12 = vor.u32 %v1404_v7, %v1289_v11  ;;  %v332_v15 = vpack.c.bf16 %v325_v6, %v324_v5  ;;  %v326_v18 = vld [vmem:[%s2036_s18 + $0x10] sm:$0xff]  ;;  %s1910_s10 = smov 32   ;;  %s1911_s30 = smov 48   ;;  %vm1011_vm1 = vcmask 130048  }
  0x2e   : > { %v1402_v13 = vld [vmem:[%s2318_s1 + $0x4] sm:$0xf]  ;;  %v1281_v14 = vld [vmem:[%s2318_s1 + $0x8] sm:$0xf0]  ;;  %v334_v16 = vpack.c.bf16 %v329_v10, %v328_v9  ;;  %v327_v19 = vld [vmem:[%s2036_s18 + $0x18] sm:$0xff]  ;;  %s1912_s13 = smov 64  }
  0x2f   : > { %v1284_v17 = vor.u32 %v1402_v13, %v1281_v14  ;;  %v330_v20 = vld [vmem:[%s2036_s18 + $0x30] sm:$0xff]  ;;  %v331_v21 = vld [vmem:[%s2036_s18 + $0x38] sm:$0xff]  ;;  %v333_v22 = vpack.c.bf16 %v327_v19, %v326_v18  ;;  %v1411_v26 = vld [vmem:[#allocation4 + $0x28] sm:$0xff]  ;;  %s1913_s15 = smov 80   ;;  %s1914_s29 = smov 96   ;;  %vm1028_vm2 = vcmask 392192  }
  0x30   : > { %v335_v23 = vpack.c.bf16 %v331_v21, %v330_v20  ;;  %v1413_v24 = vld [vmem:[#allocation4 + $0x38] sm:$0xff]  ;;  %v1412_v25 = vld [vmem:[#allocation4 + $0x30] sm:$0xff]  ;;  %v1410_v27 = vld [vmem:[#allocation4 + $0x20] sm:$0xff]  ;;  %s1915_s16 = smov 112   ;;  %vm1037_vm3 = vcmask 523264   ;;  %vm1046_vm4 = vcmask 654336  }
  0x31   : > { %386 = vmatpush.bf16.msra.mxu0 %v1280_v8  ;;  %1431 = vmatpush.bf16.msra.mxu1 %v1280_v8  ;;  %v1409_v28 = vld [vmem:[#allocation4 + $0x18] sm:$0xff]  ;;  %v1408_v29 = vld [vmem:[#allocation4 + $0x10] sm:$0xff]  ;;  %v1407_v30 = vld [vmem:[#allocation4 + $0x8] sm:$0xff]  ;;  %vm1055_vm5 = vcmask 785408   ;;  %vm1064_vm6 = vcmask 916480   ;;  %vm1174_vm7 = vcmask 105472  }
  0x32   : > { %593 = vmatpush.bf16.msra.mxu2 %v1413_v24  ;;  %v1406_v31 = vld [vmem:[#allocation4] sm:$0xff]  ;;  %v1421_v32 = vld [vmem:[#allocation4 + $0x78] sm:$0xff]  ;;  %v1420_v33 = vld [vmem:[#allocation4 + $0x70] sm:$0xff] }
  0x33   : > { %622 = vmatpush.bf16.msra.mxu3 %v1421_v32  ;;  %v1419_v34 = vld [vmem:[#allocation4 + $0x68] sm:$0xff]  ;;  %v1418_v35 = vld [vmem:[#allocation4 + $0x60] sm:$0xff]  ;;  %v1417_v36 = vld [vmem:[#allocation4 + $0x58] sm:$0xff] }
  0x34   : > { %1293 = vmatmul.msk.bf16.vlgmr.msra.gmra.mxu0 %vm366_vm0, %v332_v15  ;;  %1295 = vmatmul.msk.bf16.vlgmr.msra.gmra.mxu1 %vm366_vm0, %v334_v16  ;;  %v340_v37 = vld [vmem:[%s2319_s2] sm:$0x3]  ;;  %v1416_v40 = vld [vmem:[#allocation4 + $0x50] sm:$0xff]  ;;  %v1415_v43 = vld [vmem:[#allocation4 + $0x48] sm:$0xff] }
  0x35   : > { %414 = vmatpush.bf16.msrb.mxu1 %v1292_v12  ;;  %v342_v41 = vperm.slane %v340_v37, 0  ;;  %v1414_v48 = vld [vmem:[#allocation4 + $0x40] sm:$0xff]  ;;  %v343_v61 = vperm.slane %v340_v37, 1 }
  0x36   : > { %594 = vmatpush.bf16.msra.mxu2 %v1412_v25 }
  0x37   : > { %623 = vmatpush.bf16.msra.mxu3 %v1420_v33 }
  0x39   : > { %415 = vmatpush.bf16.msrb.mxu1 %v1284_v17 }
  0x3a   : > { %595 = vmatpush.bf16.msra.mxu2 %v1411_v26 }
  0x3b   : > { %624 = vmatpush.bf16.msra.mxu3 %v1419_v34 }
  0x3e   : > { %596 = vmatpush.bf16.msra.mxu2 %v1410_v27 }
  0x3f   : > { %625 = vmatpush.bf16.msra.mxu3 %v1418_v35 }
  0x42   : > { %597 = vmatpush.bf16.msra.mxu2 %v1409_v28 }
  0x43   : > { %626 = vmatpush.bf16.msra.mxu3 %v1417_v36 }
  0x44   : > { %1294 = vmatmul.msk.bf16.gmra.mxu0 %vm366_vm0, %v333_v22  ;;  %1296 = vmatmul.msk.bf16.gmra.mxu1 %vm366_vm0, %v335_v23 }
  0x46   : > { %598 = vmatpush.bf16.msra.mxu2 %v1408_v29 }
  0x47   : > { %627 = vmatpush.bf16.msra.mxu3 %v1416_v40  ;;  %v1802_v40 = vld [vmem:[%s2321_s4] ss:$0 sm:$0xff] }
  0x4a   : > { %599 = vmatpush.bf16.msra.mxu2 %v1407_v30 }
  0x4b   : > { %628 = vmatpush.bf16.msra.mxu3 %v1415_v43 }
  0x4e   : > { %600 = vmatpush.bf16.msra.mxu2 %v1406_v31 }
  0x4f   : > { %629 = vmatpush.bf16.msra.mxu3 %v1414_v48 }
  0x54   : > { %1297 = vmatmul.msk.bf16.vlgmr.msrb.gmra.mxu1 %vm366_vm0, %v332_v15 }
  0x64   : > { %1298 = vmatmul.msk.bf16.gmra.mxu1 %vm366_vm0, %v333_v22 }
  0x74   : > { %1299 = vmatmul.msk.bf16.gmra.mxu1 %vm366_vm0, %v334_v16 }
  0x84   : > { %1300 = vmatmul.msk.bf16.gmra.mxu1 %vm366_vm0, %v335_v23 }
  0xb1   : > { %v388_v38 = vpop.f32.mrf.mxu0  ;;  %v398_v39 = vpop.f32.mrf.mxu1 }
  0xb2   : > { %v389_v42 = vadd.f32 %v388_v38, %v342_v41  ;;  %v399_v63 = vadd.f32 %v398_v39, %v342_v41 }
  0xb4   : > { %v437_v46 = vmax.f32 %v389_v42, 0.0  ;;  %v445_v4 = vmax.f32 %v399_v63, 0.0 }
  0xb9   : > { %v390_v44 = vpop.f32.mrf.mxu0  ;;  %v400_v45 = vpop.f32.mrf.mxu1 }
  0xba   : > { %v391_v47 = vadd.f32 %v390_v44, %v342_v41  ;;  %v401_v62 = vadd.f32 %v400_v45, %v342_v41 }
  0xbc   : > { %v439_v49 = vmax.f32 %v391_v47, 0.0  ;;  %v447_v2 = vmax.f32 %v401_v62, 0.0 }
  0xbe   : > { %v453_v50 = vpack.c.bf16 %v439_v49, %v437_v46  ;;  %v457_v7 = vpack.c.bf16 %v447_v2, %v445_v4 }
  0xc0   : > { %601 = vmatmul.bf16.vlgmr.msra.gmra.mxu2 %v453_v50 }
  0xc1   : > { %v393_v51 = vpop.f32.mrf.mxu0  ;;  %v403_v52 = vpop.f32.mrf.mxu1 }
  0xc2   : > { %v394_v53 = vadd.f32 %v393_v51, %v342_v41  ;;  %v404_v11 = vadd.f32 %v403_v52, %v342_v41 }
  0xc4   : > { %v441_v56 = vmax.f32 %v394_v53, 0.0  ;;  %v449_v16 = vmax.f32 %v404_v11, 0.0 }
  0xc9   : > { %v395_v54 = vpop.f32.mrf.mxu0  ;;  %v405_v55 = vpop.f32.mrf.mxu1 }
  0xca   : > { %v396_v57 = vadd.f32 %v395_v54, %v342_v41  ;;  %v406_v10 = vadd.f32 %v405_v55, %v342_v41 }
  0xcc   : > { %v443_v58 = vmax.f32 %v396_v57, 0.0  ;;  %v451_v14 = vmax.f32 %v406_v10, 0.0 }
  0xce   : > { %v455_v59 = vpack.c.bf16 %v443_v58, %v441_v56  ;;  %v459_v19 = vpack.c.bf16 %v451_v14, %v449_v16 }
  0xd0   : > { %606 = vmatmul.bf16.gmra.mxu2 %v455_v59 }
  0xd1   : > { %v417_v60 = vpop.f32.mrf.mxu1 }
  0xd2   : > { %v418_v0 = vadd.f32 %v417_v60, %v343_v61 }
  0xd4   : > { %v438_v5 = vmax.f32 %v418_v0, 0.0 }
  0xd9   : > { %v419_v1 = vpop.f32.mrf.mxu1 }
  0xda   : > { %v420_v3 = vadd.f32 %v419_v1, %v343_v61 }
  0xdc   : > { %v440_v6 = vmax.f32 %v420_v3, 0.0 }
  0xde   : > { %v454_v8 = vpack.c.bf16 %v440_v6, %v438_v5 }
  0xe0   : > { %611 = vmatmul.bf16.gmra.mxu2 %v457_v7  ;;  %630 = vmatmul.bf16.vlgmr.msra.gmra.mxu3 %v454_v8 }
  0xe1   : > { %v422_v9 = vpop.f32.mrf.mxu1 }
  0xe2   : > { %v423_v12 = vadd.f32 %v422_v9, %v343_v61 }
  0xe4   : > { %v442_v17 = vmax.f32 %v423_v12, 0.0 }
  0xe9   : > { %v424_v13 = vpop.f32.mrf.mxu1 }
  0xea   : > { %v425_v15 = vadd.f32 %v424_v13, %v343_v61 }
  0xec   : > { %v444_v18 = vmax.f32 %v425_v15, 0.0 }
  0xee   : > { %v456_v20 = vpack.c.bf16 %v444_v18, %v442_v17 }
  0xf0   : > { %616 = vmatmul.bf16.gmra.mxu2 %v459_v19  ;;  %635 = vmatmul.bf16.gmra.mxu3 %v456_v20 }
  0xf1   : > { %v427_v21 = vpop.f32.mrf.mxu1 }
  0xf2   : > { %v428_v22 = vadd.f32 %v427_v21, %v343_v61 }
  0xf4   : > { %v446_v24 = vmax.f32 %v428_v22, 0.0 }
  0xf9   : > { %v429_v23 = vpop.f32.mrf.mxu1 }
  0xfa   : > { %v430_v25 = vadd.f32 %v429_v23, %v343_v61 }
  0xfc   : > { %v448_v26 = vmax.f32 %v430_v25, 0.0 }
  0xfe   : > { %v458_v27 = vpack.c.bf16 %v448_v26, %v446_v24 }
 0x100   : > { %640 = vmatmul.bf16.gmra.mxu3 %v458_v27 }
 0x101   : > { %v432_v28 = vpop.f32.mrf.mxu1 }
 0x102   : > { %v433_v29 = vadd.f32 %v432_v28, %v343_v61 }
 0x104   : > { %v450_v31 = vmax.f32 %v433_v29, 0.0 }
 0x109   : > { %v434_v30 = vpop.f32.mrf.mxu1 }
 0x10a   : > { %v435_v32 = vadd.f32 %v434_v30, %v343_v61 }
 0x10c   : > { %v452_v33 = vmax.f32 %v435_v32, 0.0 }
 0x10e   : > { %v460_v34 = vpack.c.bf16 %v452_v33, %v450_v31 }
 0x110   : > { %645 = vmatmul.bf16.gmra.mxu3 %v460_v34 }
 0x143   : > { %v602_v35 = vpop.f32.mrf.mxu2 }
 0x144   : > { %v603_v42 = vadd.f32 %v1802_v40, %v602_v35 }
 0x14b   : > { %v604_v36 = vpop.f32.mrf.mxu2 }
 0x14c   : > { %v605_v49 = vadd.f32 %v1802_v40, %v604_v36 }
 0x153   : > { %v607_v38 = vpop.f32.mrf.mxu2 }
 0x154   : > { %v608_v43 = vadd.f32 %v1802_v40, %v607_v38 }
 0x15b   : > { %v609_v41 = vpop.f32.mrf.mxu2 }
 0x15c   : > { %v610_v52 = vadd.f32 %v1802_v40, %v609_v41 }
 0x163   : > { %v631_v37 = vpop.f32.mrf.mxu3  ;;  %v612_v51 = vpop.f32.mrf.mxu2 }
 0x164   : > { %v632_v44 = vadd.f32 %v631_v37, %v603_v42  ;;  %v613_v63 = vadd.f32 %v1802_v40, %v612_v51 }
 0x166   : > { %v651_v47 = vmax.f32 %v632_v44, 0.0 }
 0x16b   : > { %v633_v39 = vpop.f32.mrf.mxu3  ;;  %v614_v59 = vpop.f32.mrf.mxu2 }
 0x16c   : > { %v634_v53 = vadd.f32 %v633_v39, %v605_v49  ;;  %v615_v7 = vadd.f32 %v1802_v40, %v614_v59 }
 0x16e   : > { %v652_v56 = vmax.f32 %v634_v53, 0.0 }
 0x173   : > { %v636_v45 = vpop.f32.mrf.mxu3  ;;  %v617_v62 = vpop.f32.mrf.mxu2 }
 0x174   : > { %v637_v46 = vadd.f32 %v636_v45, %v608_v43  ;;  %v618_v0 = vadd.f32 %v1802_v40, %v617_v62 }
 0x176   : > { %v653_v48 = vmax.f32 %v637_v46, 0.0 }
 0x178   : > { %v1494_v50 = vpack.i.bf16 %v653_v48, %v651_v47 }
 0x17a   : > { %1495 = vxpose.xlu0.b32.start [1/2] (short) %v1494_v50, 128 }
 0x17b   : > { %v638_v54 = vpop.f32.mrf.mxu3  ;;  %v619_v6 = vpop.f32.mrf.mxu2 }
 0x17c   : > { %v639_v55 = vadd.f32 %v638_v54, %v610_v52  ;;  %v620_v9 = vadd.f32 %v1802_v40, %v619_v6 }
 0x17e   : > { %v654_v57 = vmax.f32 %v639_v55, 0.0 }
 0x180   : > { %v1496_v58 = vpack.i.bf16 %v654_v57, %v652_v56 }
 0x182   : > { %1497 = vxpose.xlu0.b32.end [2/2] (short) %v1496_v58, 128 }
 0x183   : > { %v641_v60 = vpop.f32.mrf.mxu3 }
 0x184   : > { %v642_v1 = vadd.f32 %v641_v60, %v613_v63 }
 0x186   : > { %v655_v4 = vmax.f32 %v642_v1, 0.0 }
 0x18b   : > { %v643_v61 = vpop.f32.mrf.mxu3 }
 0x18c   : > { %v644_v10 = vadd.f32 %v643_v61, %v615_v7 }
 0x18e   : > { %v656_v13 = vmax.f32 %v644_v10, 0.0 }
 0x193   : > { %v646_v2 = vpop.f32.mrf.mxu3 }
 0x194   : > { %v647_v3 = vadd.f32 %v646_v2, %v618_v0 }
 0x196   : > { %v657_v5 = vmax.f32 %v647_v3, 0.0 }
 0x198   : > { %v1578_v8 = vpack.i.bf16 %v657_v5, %v655_v4 }
 0x19a   : > { %1579 = vxpose.xlu1.b32.start [1/2] (short) %v1578_v8, 128 }
 0x19b   : > { %v648_v11 = vpop.f32.mrf.mxu3 }
 0x19c   : > { %v649_v12 = vadd.f32 %v648_v11, %v620_v9 }
 0x19e   : > { %v658_v14 = vmax.f32 %v649_v12, 0.0 }
 0x1a0   : > { %v1580_v15 = vpack.i.bf16 %v658_v14, %v656_v13 }
 0x1a2   : > { %1581 = vxpose.xlu1.b32.end [2/2] (short) %v1580_v15, 128 }
 0x21e   : > { %v2092_v16 = vpop.trf.xlu0 }
 0x226   : > { %v2094_v17 = vpop.trf.xlu0 }
 0x22e   : > { %v1508_v18 = vpop.trf.xlu0 }
 0x22f   : > { %v1509_v21 = vunpack.i.l.bf16 %v1508_v18  ;;  %v1512_v33 = vunpack.i.h.bf16 %v1508_v18 }
 0x236   : > { %v1513_v19 = vpop.trf.xlu0 }
 0x237   : > { %v1514_v20 = vunpack.i.l.bf16 %v1513_v19  ;;  %v1517_v30 = vunpack.i.h.bf16 %v1513_v19 }
 0x239   : > { %v1662_v22 = vpack.i.bf16 %v1514_v20, %v1509_v21  ;;  %v1682_v34 = vpack.i.bf16 %v1517_v30, %v1512_v33  ;;  %v1499_v30 = vunpack.i.l.bf16 %v2092_v16 }
 0x23b   : > { %1663 = vrot.lane.b32.xlu2 %v1662_v22, %s1909_s12 }
 0x23e   : > { %v2097_v23 = vpop.trf.xlu1  ;;  %v1518_v24 = vpop.trf.xlu0 }
 0x23f   : > { %v1519_v27 = vunpack.i.l.bf16 %v1518_v24  ;;  %v1522_v38 = vunpack.i.h.bf16 %v1518_v24 }
 0x246   : > { %v2099_v25 = vpop.trf.xlu1  ;;  %v1523_v26 = vpop.trf.xlu0 }
 0x247   : > { %v1524_v28 = vunpack.i.l.bf16 %v1523_v26  ;;  %v1527_v35 = vunpack.i.h.bf16 %v1523_v26 }
 0x249   : > { %v1667_v29 = vpack.i.bf16 %v1524_v28, %v1519_v27  ;;  %v1687_v41 = vpack.i.bf16 %v1527_v35, %v1522_v38 }
 0x24b   : > { %1668 = vrot.lane.b32.xlu2 %v1667_v29, %s1910_s10 }
 0x24e   : > { %v1592_v31 = vpop.trf.xlu1  ;;  %v1528_v32 = vpop.trf.xlu0 }
 0x24f   : > { %v1529_v39 = vunpack.i.l.bf16 %v1528_v32  ;;  %v1593_v42 = vunpack.i.l.bf16 %v1592_v31  ;;  %v1532_v48 = vunpack.i.h.bf16 %v1528_v32  ;;  %v1596_v61 = vunpack.i.h.bf16 %v1592_v31 }
 0x250   : > { %v1504_v31 = vunpack.i.l.bf16 %v2094_v17 }
 0x253   : > { %1683 = vrot.lane.b32.xlu2 %v1682_v34, %s1909_s12 }
 0x256   : > { %v1597_v36 = vpop.trf.xlu1  ;;  %v1533_v37 = vpop.trf.xlu0 }
 0x257   : > { %v1534_v40 = vunpack.i.l.bf16 %v1533_v37  ;;  %v1598_v43 = vunpack.i.l.bf16 %v1597_v36  ;;  %v1537_v49 = vunpack.i.h.bf16 %v1533_v37  ;;  %v1601_v62 = vunpack.i.h.bf16 %v1597_v36 }
 0x259   : > { %v1672_v46 = vpack.i.bf16 %v1534_v40, %v1529_v39  ;;  %v1692_v47 = vpack.i.bf16 %v1598_v43, %v1593_v42  ;;  %v1697_v54 = vpack.i.bf16 %v1537_v49, %v1532_v48  ;;  %v1707_v3 = vpack.i.bf16 %v1601_v62, %v1596_v61 }
 0x25b   : > { %1688 = vrot.lane.b32.xlu2 %v1687_v41, %s1910_s10 }
 0x25e   : > { %v2104_v44 = vpop.trf.xlu1  ;;  %v1538_v45 = vpop.trf.xlu0 }
 0x25f   : > { %v1539_v50 = vunpack.i.l.bf16 %v1538_v45  ;;  %v1603_v56 = vunpack.i.l.bf16 %v2104_v44  ;;  %v1542_v11 = vunpack.i.h.bf16 %v1538_v45  ;;  %v1606_v33 = vunpack.i.h.bf16 %v2104_v44 }
 0x260   : > { %1673 = vrot.lane.b32.xlu0 %v1672_v46, %s1911_s30 }
 0x263   : > { %1693 = vrot.lane.b32.xlu2 %v1692_v47, %s1909_s12 }
 0x266   : > { %v2108_v51 = vpop.trf.xlu1  ;;  %v1543_v52 = vpop.trf.xlu0 }
 0x267   : > { %v1544_v53 = vunpack.i.l.bf16 %v1543_v52  ;;  %v1608_v57 = vunpack.i.l.bf16 %v2108_v51  ;;  %v1547_v12 = vunpack.i.h.bf16 %v1543_v52  ;;  %v1611_v34 = vunpack.i.h.bf16 %v2108_v51 }
 0x269   : > { %v1677_v55 = vpack.i.bf16 %v1544_v53, %v1539_v50  ;;  %v1702_v60 = vpack.i.bf16 %v1608_v57, %v1603_v56  ;;  %v1717_v21 = vpack.i.bf16 %v1547_v12, %v1542_v11  ;;  %v1727_v43 = vpack.i.bf16 %v1611_v34, %v1606_v33 }
 0x26b   : > { %1698 = vrot.lane.b32.xlu2 %v1697_v54, %s1911_s30 }
 0x26c   : > { %1678 = vrot.lane.b32.xlu1 %v1677_v55, %s1912_s13 }
 0x26e   : > { %v2114_v58 = vpop.trf.xlu0  ;;  %v1612_v59 = vpop.trf.xlu1 }
 0x26f   : > { %v1616_v0 = vunpack.i.h.bf16 %v1612_v59  ;;  %v1549_v5 = vunpack.i.l.bf16 %v2114_v58  ;;  %v1613_v24 = vunpack.i.l.bf16 %v1612_v59  ;;  %v1552_v49 = vunpack.i.h.bf16 %v2114_v58 }
 0x273   : > { %1703 = vrot.lane.b32.xlu2 %v1702_v60, %s1910_s10 }
 0x276   : > { %v2117_v63 = vpop.trf.xlu0  ;;  %v1617_v1 = vpop.trf.xlu1 }
 0x277   : > { %v1621_v2 = vunpack.i.h.bf16 %v1617_v1  ;;  %v1554_v6 = vunpack.i.l.bf16 %v2117_v63  ;;  %v1618_v26 = vunpack.i.l.bf16 %v1617_v1  ;;  %v1557_v50 = vunpack.i.h.bf16 %v2117_v63 }
 0x278   : > { %v1507_v1 = vunpack.i.h.bf16 %v2094_v17 }
 0x279   : > { %v2119_v4 = vpack.i.bf16 %v1621_v2, %v1616_v0  ;;  %v1712_v9 = vpack.i.bf16 %v1554_v6, %v1549_v5  ;;  %v1722_v29 = vpack.i.bf16 %v1618_v26, %v1613_v24  ;;  %v1737_v60 = vpack.i.bf16 %v1557_v50, %v1552_v49 }
 0x27a   : > { %v1502_v0 = vunpack.i.h.bf16 %v2092_v16  ;;  %v1583_v26 = vunpack.i.l.bf16 %v2097_v23 }
 0x27b   : > { %1708 = vrot.lane.b32.xlu2 %v1707_v3, %s1909_s12 }
 0x27e   : > { %v1558_v7 = vpop.trf.xlu0  ;;  %v2124_v8 = vpop.trf.xlu1 }
 0x27f   : > { %v1562_v10 = vunpack.i.h.bf16 %v1558_v7  ;;  %v1626_v14 = vunpack.i.h.bf16 %v2124_v8  ;;  %v1559_v44 = vunpack.i.l.bf16 %v1558_v7  ;;  %v1623_v58 = vunpack.i.l.bf16 %v2124_v8 }
 0x283   : > { %1713 = vrot.lane.b32.xlu2 %v1712_v9, %s1913_s15 }
 0x286   : > { %v1563_v13 = vpop.trf.xlu0  ;;  %v1627_v18 = vpop.trf.xlu1 }
 0x287   : > { %v1567_v15 = vunpack.i.h.bf16 %v1563_v13  ;;  %v1631_v19 = vunpack.i.h.bf16 %v1627_v18  ;;  %v1564_v46 = vunpack.i.l.bf16 %v1563_v13  ;;  %v1628_v62 = vunpack.i.l.bf16 %v1627_v18 }
 0x289   : > { %v2128_v20 = vpack.i.bf16 %v1567_v15, %v1562_v10  ;;  %v2130_v22 = vpack.i.bf16 %v1631_v19, %v1626_v14  ;;  %v1732_v48 = vpack.i.bf16 %v1564_v46, %v1559_v44  ;;  %v1742_v9 = vpack.i.bf16 %v1628_v62, %v1623_v58 }
 0x28b   : > { %1718 = vrot.lane.b32.xlu2 %v1717_v21, %s1912_s13 }
 0x28e   : > { %v2133_v27 = vpop.trf.xlu1  ;;  %v2135_v28 = vpop.trf.xlu0 }
 0x28f   : > { %v1572_v37 = vunpack.i.h.bf16 %v2135_v28  ;;  %v1636_v52 = vunpack.i.h.bf16 %v2133_v27  ;;  %v1569_v17 = vunpack.i.l.bf16 %v2135_v28 }
 0x293   : > { %1723 = vrot.lane.b32.xlu2 %v1722_v29, %s1911_s30  ;;  %v1588_v29 = vunpack.i.l.bf16 %v2099_v25 }
 0x295   : > { %v1664_v32 = vpop.permute.xlu2 %1663 }
 0x296   : > { %v1666_v35 = vunpack.i.h.bf16 %v1664_v32  ;;  %v1665_v36 = vunpack.i.l.bf16 %v1664_v32  ;;  %v2143_v38 = vpop.trf.xlu1  ;;  %v1573_v39 = vpop.trf.xlu0 }
 0x297   : > { %v1577_v42 = vunpack.i.h.bf16 %v1573_v39  ;;  %v1641_v53 = vunpack.i.h.bf16 %v2143_v38  ;;  %v1574_v14 = vunpack.i.l.bf16 %v1573_v39 }
 0x298   : > { %v1012_v40 = vsel %vm1011_vm1, %v1499_v30, %v1665_v36  ;;  %v1013_v41 = vsel %vm1011_vm1, %v1504_v31, %v1666_v35 }
 0x299   : > { %v2147_v45 = vpack.i.bf16 %v1577_v42, %v1572_v37  ;;  %v2161_v61 = vpack.i.bf16 %v1641_v53, %v1636_v52  ;;  %v1752_v34 = vpack.i.bf16 %v1574_v14, %v1569_v17  ;;  %v1638_v42 = vunpack.i.l.bf16 %v2143_v38  ;;  %v1424_v17 = vld [vmem:[%s2322_s5 + $0x10] sm:$0xff] }
 0x29a   : > { %v1591_v38 = vunpack.i.h.bf16 %v2099_v25 }
 0x29b   : > { %1728 = vrot.lane.b32.xlu2 %v1727_v43, %s1910_s10 }
 0x29e   : > { %v1642_v47 = vpop.trf.xlu1 }
 0x29f   : > { %v1646_v18 = vunpack.i.h.bf16 %v1642_v47  ;;  %v1643_v19 = vunpack.i.l.bf16 %v1642_v47 }
 0x2a3   : > { %1733 = vrot.lane.b32.xlu2 %v1732_v48, %s1914_s29 }
 0x2a5   : > { %v1669_v51 = vpop.permute.xlu2 %1668 }
 0x2a6   : > { %v1671_v54 = vunpack.i.h.bf16 %v1669_v51  ;;  %v1670_v55 = vunpack.i.l.bf16 %v1669_v51  ;;  %v1647_v56 = vpop.trf.xlu1 }
 0x2a7   : > { %v1651_v21 = vunpack.i.h.bf16 %v1647_v56  ;;  %v1648_v24 = vunpack.i.l.bf16 %v1647_v56 }
 0x2a8   : > { %v2156_v57 = vsel %vm366_vm0, %v1012_v40, %v1670_v55  ;;  %v2159_v59 = vsel %vm366_vm0, %v1013_v41, %v1671_v54  ;;  %v1633_v41 = vunpack.i.l.bf16 %v2133_v27  ;;  %v1586_v27 = vunpack.i.h.bf16 %v2097_v23 }
 0x2a9   : > { %v2179_v35 = vpack.i.bf16 %v1651_v21, %v1646_v18  ;;  %v1423_v18 = vld [vmem:[%s2322_s5 + $0x8] sm:$0xff] }
 0x2aa   : > { %v1762_v53 = vpack.i.bf16 %v1638_v42, %v1633_v41 }
 0x2ab   : > { %1738 = vrot.lane.b32.xlu2 %v1737_v60, %s1913_s15 }
 0x2ad   : > { %v1684_v63 = vpop.permute.xlu2 %1683 }
 0x2ae   : > { %v1686_v2 = vunpack.i.h.bf16 %v1684_v63  ;;  %v1685_v3 = vunpack.i.l.bf16 %v1684_v63  ;;  %v1652_v5 = vpop.trf.xlu1 }
 0x2af   : > { %v1656_v44 = vunpack.i.h.bf16 %v1652_v5  ;;  %v1653_v46 = vunpack.i.l.bf16 %v1652_v5 }
 0x2b0   : > { %v1014_v6 = vsel %vm1011_vm1, %v1502_v0, %v1685_v3  ;;  %v1015_v7 = vsel %vm1011_vm1, %v1507_v1, %v1686_v2  ;;  %v1429_v0 = vld [vmem:[%s2322_s5 + $0x38] sm:$0xff]  ;;  %v1428_v2 = vld [vmem:[%s2322_s5 + $0x30] sm:$0xff] }
 0x2b1   : > { %1145 = vmatpush.bf16.msrb.mxu0 %v1429_v0 }
 0x2b3   : > { %1743 = vrot.lane.b32.xlu2 %v1742_v9, %s1912_s13  ;;  %v1426_v9 = vld [vmem:[%s2322_s5 + $0x20] sm:$0xff] }
 0x2b5   : > { %v1689_v10 = vpop.permute.xlu2 %1688  ;;  %1146 = vmatpush.bf16.msrb.mxu0 %v1428_v2 }
 0x2b6   : > { %v1691_v11 = vunpack.i.h.bf16 %v1689_v10  ;;  %v1690_v12 = vunpack.i.l.bf16 %v1689_v10  ;;  %v1657_v8 = vpop.trf.xlu1 }
 0x2b7   : > { %v1661_v47 = vunpack.i.h.bf16 %v1657_v8  ;;  %v1658_v48 = vunpack.i.l.bf16 %v1657_v8 }
 0x2b8   : > { %v1022_v13 = vsel %vm366_vm0, %v1014_v6, %v1690_v12  ;;  %v1023_v16 = vsel %vm366_vm0, %v1015_v7, %v1691_v11  ;;  %v1425_v12 = vld [vmem:[%s2322_s5 + $0x18] sm:$0xff] }
 0x2b9   : > { %v1787_v54 = vpack.i.bf16 %v1658_v48, %v1653_v46  ;;  %v1797_v55 = vpack.i.bf16 %v1661_v47, %v1656_v44 }
 0x2bb   : > { %1748 = vrot.lane.b32.xlu2 %v2119_v4, %s1911_s30  ;;  %v1777_v4 = vpack.i.bf16 %v1648_v24, %v1643_v19  ;;  %v1422_v19 = vld [vmem:[%s2322_s5] sm:$0xff] }
 0x2bd   : > { %v1694_v15 = vpop.permute.xlu2 %1693 }
 0x2be   : > { %v1696_v30 = vunpack.i.h.bf16 %v1694_v15  ;;  %v1695_v31 = vunpack.i.l.bf16 %v1694_v15 }
 0x2c0   : > { %v1017_v32 = vsel %vm1011_vm1, %v1588_v29, %v1696_v30  ;;  %v1016_v33 = vsel %vm1011_vm1, %v1583_v26, %v1695_v31 }
 0x2c3   : > { %1753 = vrot.lane.b32.xlu2 %v1752_v34, %s1915_s16 }
 0x2c5   : > { %v1699_v28 = vpop.permute.xlu2 %1698 }
 0x2c6   : > { %v1701_v36 = vunpack.i.h.bf16 %v1699_v28  ;;  %v1700_v37 = vunpack.i.l.bf16 %v1699_v28 }
 0x2c8   : > { %v1031_v39 = vsel %vm1028_vm2, %v1022_v13, %v1700_v37  ;;  %v1032_v40 = vsel %vm1028_vm2, %v1023_v16, %v1701_v36 }
 0x2cb   : > { %1758 = vrot.lane.b32.xlu2 %v2128_v20, %s1914_s29 }
 0x2cd   : > { %v1704_v43 = vpop.permute.xlu2 %1703 }
 0x2ce   : > { %v1706_v49 = vunpack.i.h.bf16 %v1704_v43  ;;  %v1705_v50 = vunpack.i.l.bf16 %v1704_v43 }
 0x2d0   : > { %v1024_v51 = vsel %vm366_vm0, %v1016_v33, %v1705_v50  ;;  %v1025_v52 = vsel %vm366_vm0, %v1017_v32, %v1706_v49 }
 0x2d2   : > { %v1674_v32 = vpop.permute.xlu0 %1673 }
 0x2d3   : > { %1763 = vrot.lane.b32.xlu2 %v1762_v53, %s1913_s15  ;;  %v1675_v28 = vunpack.i.l.bf16 %v1674_v32 }
 0x2d5   : > { %v1709_v20 = vpop.permute.xlu2 %1708  ;;  %v1029_v42 = vsel %vm1028_vm2, %v2156_v57, %v1675_v28 }
 0x2d6   : > { %v1711_v56 = vunpack.i.h.bf16 %v1709_v20  ;;  %v1710_v60 = vunpack.i.l.bf16 %v1709_v20 }
 0x2d8   : > { %v1019_v58 = vsel %vm1011_vm1, %v1591_v38, %v1711_v56  ;;  %v1018_v62 = vsel %vm1011_vm1, %v1586_v27, %v1710_v60 }
 0x2db   : > { %1768 = vrot.lane.b32.xlu2 %v2130_v22, %s1912_s13 }
 0x2dd   : > { %v2197_v63 = vpop.permute.xlu2 %1713 }
 0x2de   : > { %v1679_v33 = vpop.permute.xlu1 %1678  ;;  %v1716_v49 = vunpack.i.h.bf16 %v2197_v63  ;;  %v1715_v50 = vunpack.i.l.bf16 %v2197_v63 }
 0x2e3   : > { %1773 = vrot.lane.b32.xlu2 %v2147_v45, %s1915_s16  ;;  %v1427_v45 = vld [vmem:[%s2322_s5 + $0x28] sm:$0xff] }
 0x2e4   : > { %1147 = vmatpush.bf16.msrb.mxu0 %v1427_v45 }
 0x2e5   : > { %v1719_v23 = vpop.permute.xlu2 %1718 }
 0x2e6   : > { %v1721_v25 = vunpack.i.h.bf16 %v1719_v23  ;;  %v1720_v1 = vunpack.i.l.bf16 %v1719_v23 }
 0x2e8   : > { %v2208_v22 = vsel %vm1037_vm3, %v1031_v39, %v1720_v1  ;;  %v2211_v3 = vsel %vm1037_vm3, %v1032_v40, %v1721_v25  ;;  %1148 = vmatpush.bf16.msrb.mxu0 %v1426_v9  ;;  %v1681_v39 = vunpack.i.h.bf16 %v1679_v33  ;;  %v1680_v40 = vunpack.i.l.bf16 %v1679_v33 }
 0x2ea   : > { %v1038_v44 = vsel %vm1037_vm3, %v1029_v42, %v1680_v40 }
 0x2eb   : > { %1778 = vrot.lane.b32.xlu2 %v1777_v4, %s1914_s29  ;;  %v1676_v4 = vunpack.i.h.bf16 %v1674_v32 }
 0x2ec   : > { %1149 = vmatpush.bf16.msrb.mxu0 %v1425_v12 }
 0x2ed   : > { %v1724_v5 = vpop.permute.xlu2 %1723  ;;  %v1030_v43 = vsel %vm1028_vm2, %v2159_v59, %v1676_v4 }
 0x2ee   : > { %v1726_v6 = vunpack.i.h.bf16 %v1724_v5  ;;  %v1725_v7 = vunpack.i.l.bf16 %v1724_v5  ;;  %v1039_v46 = vsel %vm1037_vm3, %v1030_v43, %v1681_v39 }
 0x2ef   : > { %v1048_v57 = vsel %vm1046_vm4, %v1039_v46, %v1716_v49 }
 0x2f0   : > { %v1033_v10 = vsel %vm1028_vm2, %v1024_v51, %v1725_v7  ;;  %v1034_v11 = vsel %vm1028_vm2, %v1025_v52, %v1726_v6  ;;  %1150 = vmatpush.bf16.msrb.mxu0 %v1424_v17  ;;  %v1047_v52 = vsel %vm1046_vm4, %v1038_v44, %v1715_v50 }
 0x2f3   : > { %1783 = vrot.lane.b32.xlu2 %v2161_v61, %s1913_s15 }
 0x2f4   : > { %1151 = vmatpush.bf16.msrb.mxu0 %v1423_v18 }
 0x2f5   : > { %v1729_v8 = vpop.permute.xlu2 %1728 }
 0x2f6   : > { %v1731_v13 = vunpack.i.h.bf16 %v1729_v8  ;;  %v1730_v16 = vunpack.i.l.bf16 %v1729_v8 }
 0x2f8   : > { %v1026_v14 = vsel %vm366_vm0, %v1018_v62, %v1730_v16  ;;  %v1027_v15 = vsel %vm366_vm0, %v1019_v58, %v1731_v13  ;;  %1152 = vmatpush.bf16.msrb.mxu0 %v1422_v19 }
 0x2fb   : > { %1788 = vrot.lane.b32.xlu2 %v1787_v54, %s1915_s16 }
 0x2fd   : > { %v1734_v61 = vpop.permute.xlu2 %1733 }
 0x2fe   : > { %v1736_v47 = vunpack.i.h.bf16 %v1734_v61  ;;  %v1735_v48 = vunpack.i.l.bf16 %v1734_v61 }
 0x300   : > { %v1056_v54 = vsel %vm1055_vm5, %v1047_v52, %v1735_v48 }
 0x303   : > { %1793 = vrot.lane.b32.xlu2 %v2179_v35, %s1914_s29  ;;  %s2330_s29 = sadd.s32 4294967295, %s1902_s27  }
 0x305   : > { %v1739_v21 = vpop.permute.xlu2 %1738 }
 0x306   : > { %v1741_v62 = vunpack.i.h.bf16 %v1739_v21  ;;  %v1740_v63 = vunpack.i.l.bf16 %v1739_v21 }
 0x308   : > { %v1049_v1 = vsel %vm1046_vm4, %v2208_v22, %v1740_v63  ;;  %v1050_v2 = vsel %vm1046_vm4, %v2211_v3, %v1741_v62 }
 0x30b   : > { %1798 = vrot.lane.b32.xlu2 %v1797_v55, %s1915_s16  ;;  %v1057_v55 = vsel %vm1055_vm5, %v1048_v57, %v1736_v47  ;;  %s1274_s16 = sshll.u32 %s2330_s29, 2 }
 0x30c   : > { %p317_p1 = scmp.lt.s32.totalorder %s1274_s16, 7 }
 0x30d   : > { %v1744_v24 = vpop.permute.xlu2 %1743 }
 0x30e   : > { %v1746_v26 = vunpack.i.h.bf16 %v1744_v24  ;;  %v1745_v29 = vunpack.i.l.bf16 %v1744_v24  ;;  %s2336_s16 = smov (!%p317_p1, %s1274_s16), 7 }
 0x30f   : > { %s1401_s21 = sshll.u32 %s2336_s16, 4 }
 0x310   : > { %v1042_v30 = vsel %vm1037_vm3, %v1033_v10, %v1745_v29  ;;  %v1043_v31 = vsel %vm1037_vm3, %v1034_v11, %v1746_v26  ;;  %s321_s8 = scalar_lea.vmem %s2324_s7, %s1401_s21 }
 0x315   : > { %v1749_v34 = vpop.permute.xlu2 %1748 }
 0x316   : > { %v1751_v36 = vunpack.i.h.bf16 %v1749_v34  ;;  %v1750_v37 = vunpack.i.l.bf16 %v1749_v34 }
 0x318   : > { %v2245_v35 = vsel %vm1028_vm2, %v1026_v14, %v1750_v37  ;;  %v2248_v41 = vsel %vm1028_vm2, %v1027_v15, %v1751_v36 }
 0x31d   : > { %v1754_v51 = vpop.permute.xlu2 %1753 }
 0x31e   : > { %v1756_v53 = vunpack.i.h.bf16 %v1754_v51  ;;  %v1755_v59 = vunpack.i.l.bf16 %v1754_v51 }
 0x320   : > { %v1065_v20 = vsel %vm1064_vm6, %v1056_v54, %v1755_v59  ;;  %v1066_v27 = vsel %vm1064_vm6, %v1057_v55, %v1756_v53 }
 0x321   : > { %v1073_v38 = vpack.c.bf16 %v1066_v27, %v1065_v20 }
 0x323   : > { %1153 = vmatmul.bf16.vlgmr.msrb.gmra.mxu0 %v1073_v38 }
 0x325   : > { %v1759_v56 = vpop.permute.xlu2 %1758 }
 0x326   : > { %v1761_v0 = vunpack.i.h.bf16 %v1759_v56  ;;  %v1760_v23 = vunpack.i.l.bf16 %v1759_v56 }
 0x328   : > { %v1058_v6 = vsel %vm1055_vm5, %v1049_v1, %v1760_v23  ;;  %v1059_v7 = vsel %vm1055_vm5, %v1050_v2, %v1761_v0 }
 0x32d   : > { %v1764_v60 = vpop.permute.xlu2 %1763 }
 0x32e   : > { %v1766_v13 = vunpack.i.h.bf16 %v1764_v60  ;;  %v1765_v16 = vunpack.i.l.bf16 %v1764_v60 }
 0x330   : > { %v1051_v3 = vsel %vm1046_vm4, %v1042_v30, %v1765_v16  ;;  %v1052_v15 = vsel %vm1046_vm4, %v1043_v31, %v1766_v13 }
 0x335   : > { %v1769_v58 = vpop.permute.xlu2 %1768 }
 0x336   : > { %v1771_v33 = vunpack.i.h.bf16 %v1769_v58  ;;  %v1770_v34 = vunpack.i.l.bf16 %v1769_v58 }
 0x338   : > { %v1044_v36 = vsel %vm1037_vm3, %v2245_v35, %v1770_v34  ;;  %v1045_v37 = vsel %vm1037_vm3, %v2248_v41, %v1771_v33  ;;  %v1803_v35 = vld [vmem:[%s2323_s6] ss:$0 sm:$0xff] }
 0x33d   : > { %v1774_v25 = vpop.permute.xlu2 %1773 }
 0x33e   : > { %v1776_v45 = vunpack.i.h.bf16 %v1774_v25  ;;  %v1775_v5 = vunpack.i.l.bf16 %v1774_v25 }
 0x340   : > { %v1067_v9 = vsel %vm1064_vm6, %v1058_v6, %v1775_v5  ;;  %v1068_v10 = vsel %vm1064_vm6, %v1059_v7, %v1776_v45 }
 0x341   : > { %v1074_v11 = vpack.c.bf16 %v1068_v10, %v1067_v9 }
 0x343   : > { %1158 = vmatmul.bf16.gmra.mxu0 %v1074_v11 }
 0x345   : > { %v1779_v12 = vpop.permute.xlu2 %1778 }
 0x346   : > { %v1781_v22 = vunpack.i.h.bf16 %v1779_v12  ;;  %v1780_v17 = vunpack.i.l.bf16 %v1779_v12 }
 0x348   : > { %v1060_v19 = vsel %vm1055_vm5, %v1051_v3, %v1780_v17  ;;  %v1061_v21 = vsel %vm1055_vm5, %v1052_v15, %v1781_v22 }
 0x34d   : > { %v1784_v8 = vpop.permute.xlu2 %1783 }
 0x34e   : > { %v1786_v4 = vunpack.i.h.bf16 %v1784_v8  ;;  %v1785_v28 = vunpack.i.l.bf16 %v1784_v8 }
 0x350   : > { %v1053_v40 = vsel %vm1046_vm4, %v1044_v36, %v1785_v28  ;;  %v1054_v42 = vsel %vm1046_vm4, %v1045_v37, %v1786_v4 }
 0x355   : > { %v1789_v14 = vpop.permute.xlu2 %1788 }
 0x356   : > { %v1791_v18 = vunpack.i.h.bf16 %v1789_v14  ;;  %v1790_v61 = vunpack.i.l.bf16 %v1789_v14 }
 0x358   : > { %v1069_v24 = vsel %vm1064_vm6, %v1060_v19, %v1790_v61  ;;  %v1070_v26 = vsel %vm1064_vm6, %v1061_v21, %v1791_v18 }
 0x359   : > { %v1075_v29 = vpack.c.bf16 %v1070_v26, %v1069_v24 }
 0x35b   : > { %1163 = vmatmul.bf16.gmra.mxu0 %v1075_v29 }
 0x35d   : > { %v1794_v32 = vpop.permute.xlu2 %1793 }
 0x35e   : > { %v1796_v30 = vunpack.i.h.bf16 %v1794_v32  ;;  %v1795_v31 = vunpack.i.l.bf16 %v1794_v32 }
 0x360   : > { %v1062_v46 = vsel %vm1055_vm5, %v1053_v40, %v1795_v31  ;;  %v1063_v47 = vsel %vm1055_vm5, %v1054_v42, %v1796_v30 }
 0x365   : > { %v1799_v39 = vpop.permute.xlu2 %1798 }
 0x366   : > { %v1801_v43 = vunpack.i.h.bf16 %v1799_v39  ;;  %v1800_v44 = vunpack.i.l.bf16 %v1799_v39 }
 0x368   : > { %v1071_v48 = vsel %vm1064_vm6, %v1062_v46, %v1800_v44  ;;  %v1072_v49 = vsel %vm1064_vm6, %v1063_v47, %v1801_v43 }
 0x369   : > { %v1076_v50 = vpack.c.bf16 %v1072_v49, %v1071_v48 }
 0x36b   : > { %1168 = vmatmul.bf16.gmra.mxu0 %v1076_v50 }
 0x3a0   : > { %v1154_v41 = vpop.f32.mrf.mxu0 }
 0x3a1   : > { %v1155_v51 = vadd.f32 %v1803_v35, %v1154_v41 }
 0x3a3   : > { %1175 = vst.msk [vmem:[%s321_s8] sm:$0xff] %vm1174_vm7, %v1155_v51 }
 0x3a8   : > { %v1156_v52 = vpop.f32.mrf.mxu0 }
 0x3a9   : > { %v1157_v57 = vadd.f32 %v1803_v35, %v1156_v52 }
 0x3ab   : > { %1176 = vst.msk [vmem:[%s321_s8 + $0x8] sm:$0xff] %vm1174_vm7, %v1157_v57 }
 0x3c0   : > { %v1159_v53 = vpop.f32.mrf.mxu0 }
 0x3c1   : > { %v1160_v59 = vadd.f32 %v1803_v35, %v1159_v53 }
 0x3c3   : > { %1177 = vst.msk [vmem:[%s321_s8 + $0x10] sm:$0xff] %vm1174_vm7, %v1160_v59 }
 0x3c8   : > { %v1161_v54 = vpop.f32.mrf.mxu0 }
 0x3c9   : > { %v1162_v55 = vadd.f32 %v1803_v35, %v1161_v54 }
 0x3cb   : > { %1178 = vst.msk [vmem:[%s321_s8 + $0x18] sm:$0xff] %vm1174_vm7, %v1162_v55 }
 0x3d8   : > { %v1164_v20 = vpop.f32.mrf.mxu0 }
 0x3d9   : > { %v1165_v27 = vadd.f32 %v1803_v35, %v1164_v20 }
 0x3db   : > { %1179 = vst.msk [vmem:[%s321_s8 + $0x20] sm:$0xff] %vm1174_vm7, %v1165_v27 }
 0x3e0   : > { %v1166_v38 = vpop.f32.mrf.mxu0 }
 0x3e1   : > { %v1167_v56 = vadd.f32 %v1803_v35, %v1166_v38 }
 0x3e3   : > { %1180 = vst.msk [vmem:[%s321_s8 + $0x28] sm:$0xff] %vm1174_vm7, %v1167_v56 }
 0x3e8   : > { %v1169_v60 = vpop.f32.mrf.mxu0 }
 0x3e9   : > { %v1170_v58 = vadd.f32 %v1803_v35, %v1169_v60 }
 0x3eb   : > { %1181 = vst.msk [vmem:[%s321_s8 + $0x30] sm:$0xff] %vm1174_vm7, %v1170_v58 }
 0x3f0   : > { %v1171_v62 = vpop.f32.mrf.mxu0 }
 0x3f1   : > { %v1172_v63 = vadd.f32 %v1803_v35, %v1171_v62 }
 0x3f3   : > { %1182 = vst.msk [vmem:[%s321_s8 + $0x38] sm:$0xff] %vm1174_vm7, %v1172_v63 }
 0x3f4 PF: > { %p18_p4 = scmp.ge.s32.totalorder %s2002_s14, 4   ;;  %s2331_s24 = smov %s1894_s25 }
 0x3f5   : > { %s2332_s25 = smov %s1898_s26  ;;  %s2333_s26 = smov %s2012_s19 }
 0x3f6   : > { %s2334_s27 = smov %s2002_s14  ;;  %20 = sbr.rel (!%p18_p4) target bundleno = 4 (0x4), region = 92 }
 0x3fb   :  { %1207 = vsyncpa [#allocation3], 1 }
 0x3fc   :  { %1209 = vsyncpa [#allocation3 + $0x1], 1 }
 0x3fd   :  { %1210 = vsyncpa [#allocation5], 1 }

</bundles_post_ra>
